<compile_context>
chip_gen: v5e
topology: v5e:2x2
jax: 0.10.0
libtpu: 0.0.40
codegen_flags: <defaults>
</compile_context>

<pallas_src>
import jax
import jax.numpy as jnp
from jax.experimental import pallas as pl
from jax.experimental.pallas import tpu as pltpu


EPS = 1e-5
_BUDGET_ELEMS = (2 * 1024 * 1024) // 4   # ~2 MiB of f32 per tile
_FUSED_MAX_ELEMS = 256 * 1024            # whole-tensor-in-VMEM fused path


# ---------------------------------------------------------------------------
# Tiling helpers
# ---------------------------------------------------------------------------
def _sublane_multiple(itemsize):
    # Sub-32-bit dtypes pack 2/4 rows per sublane.
    return {1: 32, 2: 16}.get(itemsize, 8)


def _largest_divisor(n, cap, mult):
    """Largest d <= cap with d % mult == 0 and n % d == 0 (None if no such d)."""
    d = (min(cap, n) // mult) * mult
    while d >= mult:
        if n % d == 0:
            return d
        d -= mult
    return None


def _vmem_limit(*byte_counts):
    need = sum(byte_counts) + (4 << 20)      # headroom for outputs / spills
    return int(max(need, 16 << 20))


def _plan_3d(N, C, L, itemsize):
    sub = _sublane_multiple(itemsize)
    budget = _BUDGET_ELEMS
    # Pad only when a full-dim fallback block would exceed the tile budget.
    pad_c = ((-C) % sub) if (C % sub != 0 and C * 128 > budget) else 0
    Cp = C + pad_c
    min_rows = Cp if Cp % sub != 0 else sub
    pad_l = ((-L) % 128) if (L % 128 != 0 and min_rows * L > budget) else 0
    Lp = L + pad_l

    # Lane tile: wide & lane-dense (prefer 512-2048) when L is 128-aligned.
    if Lp % 128 == 0:
        lane_cap = max(128, min(2048, (budget // min_rows) // 128 * 128))
        tl = _largest_divisor(Lp, min(Lp, lane_cap), 128) or 128
    else:
        tl = Lp                                  # small full-dim block
    # Channel (sublane) tile.
    if Cp % sub != 0:
        tc = Cp                                  # full-dim block (bounded, see pads)
    else:
        cap = min(Cp, max(sub, (budget // tl) // sub * sub))
        if Cp >= 2 * sub:                        # >=2 channel tiles: v7x megacore
            cap = min(cap, max(sub, (Cp // 2) // sub * sub))
        tc = _largest_divisor(Cp, cap, sub) or sub
    # Batch tile: soak up the remaining budget (amortizes per-step overhead
    # for short-L shapes).
    tn_cap = max(1, budget // (tc * tl))
    tn = 1
    for d in range(min(N, tn_cap, 4096), 0, -1):
        if N % d == 0:
            tn = d
            break
    return pad_c, pad_l, tn, tc, tl


def _plan_2d(N, C, itemsize):
    sub = _sublane_multiple(itemsize)
    budget = _BUDGET_ELEMS
    pad_c = ((-C) % 128) if (C % 128 != 0 and sub * C > budget) else 0
    Cp = C + pad_c
    if Cp % 128 == 0:
        lane_cap = max(128, min(2048, (budget // sub) // 128 * 128))
        if Cp >= 256:                            # >=2 lane tiles: v7x megacore
            lane_cap = min(lane_cap, max(128, (Cp // 2) // 128 * 128))
        tcl = _largest_divisor(Cp, min(Cp, lane_cap), 128) or 128
    else:
        tcl = Cp
    pad_n = ((-N) % sub) if (N % sub != 0 and N * tcl > budget) else 0
    Np = N + pad_n
    if Np % sub != 0:
        tn = Np
    else:
        cap = min(Np, max(sub, (budget // tcl) // sub * sub))
        tn = _largest_divisor(Np, cap, sub) or sub
    return pad_n, pad_c, tn, tcl


# ---------------------------------------------------------------------------
# Fused single-kernel path (whole tensor resident in VMEM): 2x HBM traffic.
# ---------------------------------------------------------------------------
def _bn3d_fused_kernel(x_ref, gamma_ref, beta_ref, o_ref):
    x = x_ref[...].astype(jnp.float32)                              # (N, C, L)
    n, _, l = x.shape
    inv_cnt = jnp.float32(1.0 / (n * l))
    s = jnp.sum(jnp.sum(x, axis=0), axis=-1, keepdims=True)         # (C, 1)
    q = jnp.sum(jnp.sum(x * x, axis=0), axis=-1, keepdims=True)     # (C, 1)
    mean = s * inv_cnt
    var = jnp.maximum(q * inv_cnt - mean * mean, 0.0)
    scale = gamma_ref[...] * jax.lax.rsqrt(var + EPS)                # (C, 1)
    shift = beta_ref[...] - mean * scale
    # Exact torch semantics: any NaN anywhere -> identity passthrough, folded
    # into scale/shift (x * 1 + (-0.0) == x bit-exactly, NaN propagates).
    nan_c = jnp.sum(jnp.sum(jnp.isnan(x).astype(jnp.float32), axis=0),
                    axis=-1, keepdims=True)                          # (C, 1)
    has_nan = jnp.sum(nan_c, axis=0, keepdims=True) > 0.0            # (1, 1)
    scale = jnp.where(has_nan, jnp.float32(1.0), scale)
    shift = jnp.where(has_nan, jnp.float32(-0.0), shift)
    o_ref[...] = (x * scale[None] + shift[None]).astype(o_ref.dtype)


def _bn3d_fused(x, gamma, beta):
    N, C, L = x.shape
    g = gamma.reshape(C, 1).astype(jnp.float32)
    b = beta.reshape(C, 1).astype(jnp.float32)
    return pl.pallas_call(
        _bn3d_fused_kernel,
        out_shape=jax.ShapeDtypeStruct((N, C, L), x.dtype),
        grid=(1,),
        in_specs=[pl.BlockSpec((N, C, L), lambda i: (0, 0, 0)),
                  pl.BlockSpec((C, 1), lambda i: (0, 0)),
                  pl.BlockSpec((C, 1), lambda i: (0, 0))],
        out_specs=pl.BlockSpec((N, C, L), lambda i: (0, 0, 0)),
        compiler_params=pltpu.CompilerParams(
            dimension_semantics=("arbitrary",),
            vmem_limit_bytes=32 * 1024 * 1024),
    )(x, g, b)


# ---------------------------------------------------------------------------
# Streaming 3-D path (two passes, ~3x HBM traffic)
# ---------------------------------------------------------------------------
def _bn3d_stats_kernel(x_ref, sum_ref, sumsq_ref, acc_sum, acc_sq):
    ni, li = pl.program_id(1), pl.program_id(2)
    first = jnp.logical_and(ni == 0, li == 0)
    last = jnp.logical_and(ni == pl.num_programs(1) - 1,
                           li == pl.num_programs(2) - 1)

    @pl.when(first)
    def _():
        acc_sum[...] = jnp.zeros_like(acc_sum)
        acc_sq[...] = jnp.zeros_like(acc_sq)

    x = x_ref[...].astype(jnp.float32)                 # (tn, tc, tl)
    acc_sum[...] += jnp.sum(x, axis=0)                 # element-wise VPU adds
    acc_sq[...] += jnp.sum(x * x, axis=0)

    @pl.when(last)
    def _():
        # One small cross-lane (XLU) reduce per channel tile at the very end.
        sum_ref[...] = jnp.sum(acc_sum[...], axis=-1, keepdims=True)    # (tc, 1)
        sumsq_ref[...] = jnp.sum(acc_sq[...], axis=-1, keepdims=True)


def _bn3d_apply_kernel(x_ref, scale_ref, shift_ref, o_ref):
    x = x_ref[...].astype(jnp.float32)                 # (tn, tc, tl)
    y = x * scale_ref[...][None] + shift_ref[...][None]
    o_ref[...] = y.astype(o_ref.dtype)


def _bn3d_streaming(x, gamma, beta):
    N, C, L = x.shape
    itemsize = x.dtype.itemsize
    pad_c, pad_l, tn, tc, tl = _plan_3d(N, C, L, itemsize)
    if pad_c or pad_l:
        # Rare fallback for large badly-aligned dims: zero-pad (zeros are
        # transparent to sum/sumsq; `count` below uses the true N*L).
        # TODO(synk): masked tail tiles would avoid this extra HBM copy.
        x = jnp.pad(x, ((0, 0), (0, pad_c), (0, pad_l)))
    Np, Cp, Lp = x.shape
    nc, nn, nl = Cp // tc, Np // tn, Lp // tl

    in_tile = tn * tc * tl * itemsize
    acc_tile = tc * tl * 4

    # -------- pass 1: per-channel sum / sum-of-squares ----------------------
    csum, csumsq = pl.pallas_call(
        _bn3d_stats_kernel,
        out_shape=(jax.ShapeDtypeStruct((Cp, 1), jnp.float32),
                   jax.ShapeDtypeStruct((Cp, 1), jnp.float32)),
        grid=(nc, nn, nl),
        in_specs=[pl.BlockSpec((tn, tc, tl), lambda ci, ni, li: (ni, ci, li))],
        out_specs=(pl.BlockSpec((tc, 1), lambda ci, ni, li: (ci, 0)),
                   pl.BlockSpec((tc, 1), lambda ci, ni, li: (ci, 0))),
        scratch_shapes=[pltpu.VMEM((tc, tl), jnp.float32),
                        pltpu.VMEM((tc, tl), jnp.float32)],
        compiler_params=pltpu.CompilerParams(
            dimension_semantics=("parallel", "arbitrary", "arbitrary"),
            vmem_limit_bytes=_vmem_limit(2 * in_tile, 2 * acc_tile)),
    )(x)

    # -------- O(C) glue: fold stats + NaN guard into per-channel affine ------
    gamma_p = jnp.pad(gamma.astype(jnp.float32), (0, pad_c))
    beta_p = jnp.pad(beta.astype(jnp.float32), (0, pad_c))
    count = jnp.float32(N * L)                           # true element count
    mean = csum[:, 0] / count
    var = jnp.maximum(csumsq[:, 0] / count - mean * mean, 0.0)
    inv_std = jax.lax.rsqrt(var + EPS)
    # sumsq is NaN iff some x is NaN (sums of non-negative terms never turn
    # +/-Inf into NaN), so this matches torch.isnan(input).sum() == 0 exactly.
    has_nan = jnp.any(jnp.isnan(csumsq))
    scale = jnp.where(has_nan, 1.0, gamma_p * inv_std).reshape(Cp, 1)
    shift = jnp.where(has_nan, -0.0,
                      beta_p - mean * gamma_p * inv_std).reshape(Cp, 1)

    # -------- pass 2: y = x * scale + shift (pure streaming map) -------------
    y = pl.pallas_call(
        _bn3d_apply_kernel,
        out_shape=jax.ShapeDtypeStruct((Np, Cp, Lp), x.dtype),
        grid=(nc, nn, nl),
        in_specs=[pl.BlockSpec((tn, tc, tl), lambda ci, ni, li: (ni, ci, li)),
                  pl.BlockSpec((tc, 1), lambda ci, ni, li: (ci, 0)),
                  pl.BlockSpec((tc, 1), lambda ci, ni, li: (ci, 0))],
        out_specs=pl.BlockSpec((tn, tc, tl), lambda ci, ni, li: (ni, ci, li)),
        compiler_params=pltpu.CompilerParams(
            dimension_semantics=("parallel", "parallel", "parallel"),
            vmem_limit_bytes=_vmem_limit(2 * in_tile, 2 * in_tile)),
    )(x, scale, shift)

    if pad_c or pad_l:
        y = y[:, :C, :L]
    return y


# ---------------------------------------------------------------------------
# Lane-dense 2-D (N, C) path: channels on the lane axis, reduce over N.
# ---------------------------------------------------------------------------
def _bn2d_stats_kernel(x_ref, sum_ref, sumsq_ref, acc_sum, acc_sq):
    ni = pl.program_id(1)

    @pl.when(ni == 0)
    def _():
        acc_sum[...] = jnp.zeros_like(acc_sum)
        acc_sq[...] = jnp.zeros_like(acc_sq)

    x = x_ref[...].astype(jnp.float32)                 # (tn, tcl)
    acc_sum[...] += x
    acc_sq[...] += x * x

    @pl.when(ni == pl.num_programs(1) - 1)
    def _():
        sum_ref[...] = jnp.sum(acc_sum[...], axis=0, keepdims=True)    # (1, tcl)
        sumsq_ref[...] = jnp.sum(acc_sq[...], axis=0, keepdims=True)


def _bn2d_apply_kernel(x_ref, scale_ref, shift_ref, o_ref):
    x = x_ref[...].astype(jnp.float32)                 # (tn, tcl)
    o_ref[...] = (x * scale_ref[...] + shift_ref[...]).astype(o_ref.dtype)


def _bn2d(x, gamma, beta):
    N, C = x.shape
    itemsize = x.dtype.itemsize
    pad_n, pad_c, tn, tcl = _plan_2d(N, C, itemsize)
    if pad_n or pad_c:
        x = jnp.pad(x, ((0, pad_n), (0, pad_c)))
    Np, Cp = x.shape
    ncl, nn = Cp // tcl, Np // tn

    in_tile = tn * tcl * itemsize
    acc_tile = tn * tcl * 4

    csum, csumsq = pl.pallas_call(
        _bn2d_stats_kernel,
        out_shape=(jax.ShapeDtypeStruct((1, Cp), jnp.float32),
                   jax.ShapeDtypeStruct((1, Cp), jnp.float32)),
        grid=(ncl, nn),
        in_specs=[pl.BlockSpec((tn, tcl), lambda ci, ni: (ni, ci))],
        out_specs=(pl.BlockSpec((1, tcl), lambda ci, ni: (0, ci)),
                   pl.BlockSpec((1, tcl), lambda ci, ni: (0, ci))),
        scratch_shapes=[pltpu.VMEM((tn, tcl), jnp.float32),
                        pltpu.VMEM((tn, tcl), jnp.float32)],
        compiler_params=pltpu.CompilerParams(
            dimension_semantics=("parallel", "arbitrary"),
            vmem_limit_bytes=_vmem_limit(2 * in_tile, 2 * acc_tile)),
    )(x)

    gamma_p = jnp.pad(gamma.astype(jnp.float32), (0, pad_c))
    beta_p = jnp.pad(beta.astype(jnp.float32), (0, pad_c))
    count = jnp.float32(N)                               # true row count
    mean = csum[0] / count
    var = jnp.maximum(csumsq[0] / count - mean * mean, 0.0)
    inv_std = jax.lax.rsqrt(var + EPS)
    has_nan = jnp.any(jnp.isnan(csumsq))
    scale = jnp.where(has_nan, 1.0, gamma_p * inv_std).reshape(1, Cp)
    shift = jnp.where(has_nan, -0.0,
                      beta_p - mean * gamma_p * inv_std).reshape(1, Cp)

    y = pl.pallas_call(
        _bn2d_apply_kernel,
        out_shape=jax.ShapeDtypeStruct((Np, Cp), x.dtype),
        grid=(ncl, nn),
        in_specs=[pl.BlockSpec((tn, tcl), lambda ci, ni: (ni, ci)),
                  pl.BlockSpec((1, tcl), lambda ci, ni: (0, ci)),
                  pl.BlockSpec((1, tcl), lambda ci, ni: (0, ci))],
        out_specs=pl.BlockSpec((tn, tcl), lambda ci, ni: (ni, ci)),
        compiler_params=pltpu.CompilerParams(
            dimension_semantics=("parallel", "parallel"),
            vmem_limit_bytes=_vmem_limit(2 * in_tile, 2 * in_tile)),
    )(x, scale, shift)

    if pad_n or pad_c:
        y = y[:N, :C]
    return y


# ---------------------------------------------------------------------------
# Public entry point
# ---------------------------------------------------------------------------
@jax.jit
def batch_norm_1d(x, gamma, beta):
    """Training-mode BatchNorm1d forward with NaN passthrough guard.

    x: (N, C, L) or (N, C).  gamma/beta: (C,).
    """
    if x.ndim == 2:
        return _bn2d(x, gamma, beta)
    assert x.ndim == 3, "BatchNorm1d expects (N, C) or (N, C, L) inputs"
    N, C, L = x.shape
    if N * C * L <= _FUSED_MAX_ELEMS:
        return _bn3d_fused(x, gamma, beta)
    return _bn3d_streaming(x, gamma, beta)


# TODO(synk): nn.BatchNorm1d also updates running_mean/running_var buffers in
# training; that side effect is not part of the returned output and is not
# reproduced here.


# ---------------------------------------------------------------------------
# Pure-JAX reference (training-mode BatchNorm1d + NaN guard)
# ---------------------------------------------------------------------------
def _reference_bn(x, gamma, beta):
    xf = x.astype(jnp.float32)
    axes = (0,) if x.ndim == 2 else (0, 2)
    mean = jnp.mean(xf, axis=axes, keepdims=True)
    var = jnp.mean((xf - mean) ** 2, axis=axes, keepdims=True)
    g = gamma.astype(jnp.float32)
    b = beta.astype(jnp.float32)
    if x.ndim == 3:
        g, b = g[None, :, None], b[None, :, None]
    else:
        g, b = g[None, :], b[None, :]
    y = (xf - mean) * jax.lax.rsqrt(var + EPS) * g + b
    return jnp.where(jnp.sum(jnp.isnan(xf)) == 0, y, xf).astype(x.dtype)


if __name__ == "__main__":
    key = jax.random.PRNGKey(0)
    k1, k2, k3, k4, k5 = jax.random.split(key, 5)

    # --- primary small example (batch=2, channels=4, length=16): fused path --
    N, C, L = 2, 4, 16
    x = jax.random.normal(k1, (N, C, L), dtype=jnp.float32)
    gamma = 1.0 + 0.1 * jnp.arange(C, dtype=jnp.float32)
    beta = 0.01 * jnp.arange(C, dtype=jnp.float32)
    out = jax.block_until_ready(batch_norm_1d(x, gamma, beta))
    ref = _reference_bn(x, gamma, beta)
    assert out.shape == x.shape and out.dtype == x.dtype
    assert jnp.allclose(out, ref, atol=2e-5, rtol=2e-5), "fused mismatch"

    # NaN guard (fused path): any NaN anywhere -> identity passthrough.
    x_nan = x.at[0, 1, 3].set(jnp.nan)
    out_nan = jax.block_until_ready(batch_norm_1d(x_nan, gamma, beta))
    assert bool(jnp.allclose(out_nan, x_nan, equal_nan=True)), "NaN passthrough"

    # --- streaming 3-D path (grid > 1 on every axis; megacore channel split) -
    N2, C2, L2 = 32, 32, 2560
    x2 = jax.random.normal(k2, (N2, C2, L2), dtype=jnp.float32) + 0.25
    g2 = 1.0 + 0.05 * jnp.arange(C2, dtype=jnp.float32)
    b2 = 0.02 * jnp.arange(C2, dtype=jnp.float32)
    out2 = jax.block_until_ready(batch_norm_1d(x2, g2, b2))
    ref2 = _reference_bn(x2, g2, b2)
    assert jnp.allclose(out2, ref2, atol=1e-3, rtol=1e-3), "streaming mismatch"

    # NaN guard on the streaming path (detected via the sum-of-squares).
    x2n = x2.at[3, 7, 11].set(jnp.nan)
    out2n = jax.block_until_ready(batch_norm_1d(x2n, g2, b2))
    assert bool(jnp.allclose(out2n, x2n, equal_nan=True)), "streaming NaN"

    # --- bf16 streaming (dtype-aware 16-row sublane tiles) -------------------
    N3, C3, L3 = 16, 64, 1280
    x3 = jax.random.normal(k3, (N3, C3, L3), dtype=jnp.float32).astype(jnp.bfloat16)
    g3 = jnp.ones((C3,), jnp.float32)
    b3 = jnp.zeros((C3,), jnp.float32)
    out3 = jax.block_until_ready(batch_norm_1d(x3, g3, b3))
    ref3 = _reference_bn(x3, g3, b3)
    assert jnp.allclose(out3.astype(jnp.float32), ref3.astype(jnp.float32),
                        atol=6e-2, rtol=3e-2), "bf16 mismatch"

    # --- 2-D (N, C) inputs: lane-dense path (channels on the lane axis) ------
    x4 = jax.random.normal(k4, (6, 8), dtype=jnp.float32)
    g4 = 1.0 + 0.1 * jnp.arange(8, dtype=jnp.float32)
    b4 = 0.05 * jnp.arange(8, dtype=jnp.float32)
    out4 = jax.block_until_ready(batch_norm_1d(x4, g4, b4))
    ref4 = _reference_bn(x4, g4, b4)
    assert jnp.allclose(out4, ref4, atol=1e-4, rtol=1e-4), "2D small mismatch"

    x5 = jax.random.normal(k5, (4096, 192), dtype=jnp.float32)
    g5 = jnp.ones((192,), jnp.float32)
    b5 = jnp.zeros((192,), jnp.float32)
    out5 = jax.block_until_ready(batch_norm_1d(x5, g5, b5))
    ref5 = _reference_bn(x5, g5, b5)
    assert jnp.allclose(out5, ref5, atol=1e-3, rtol=1e-3), "2D streaming mismatch"

    print("KERNEL_OK")
</pallas_src>

<mosaic_0001>
module attributes {stable_mosaic.version = 11 : i64} {
  func.func @_bn3d_fused_kernel(%arg0: i32, %arg1: memref<2x4x16xf32, #tpu.memory_space<vmem>>, %arg2: memref<4x1xf32, #tpu.memory_space<vmem>>, %arg3: memref<4x1xf32, #tpu.memory_space<vmem>>, %arg4: memref<2x4x16xf32, #tpu.memory_space<vmem>>) attributes {dimension_semantics = [#tpu.dimension_semantics<arbitrary>], iteration_bounds = array<i64: 1>, scalar_prefetch = 0 : i64, scratch_operands = 0 : i64, tpu.core_type = #tpu.core_type<tc>, window_params = [{pipeline_mode = #tpu.pipeline_mode<synchronous>, transform_indices = @transform_0, window_bounds = array<i64: 2, 4, 16>}, {pipeline_mode = #tpu.pipeline_mode<synchronous>, transform_indices = @transform_1, window_bounds = array<i64: 4, 1>}, {pipeline_mode = #tpu.pipeline_mode<synchronous>, transform_indices = @transform_2, window_bounds = array<i64: 4, 1>}, {pipeline_mode = #tpu.pipeline_mode<synchronous>, transform_indices = @transform_3, window_bounds = array<i64: 2, 4, 16>}]} {
    %c0 = arith.constant 0 : index
    %c0_0 = arith.constant 0 : index
    %c0_1 = arith.constant 0 : index
    %0 = vector.load %arg1[%c0, %c0_0, %c0_1] : memref<2x4x16xf32, #tpu.memory_space<vmem>>, vector<2x4x16xf32>
    %cst = arith.constant dense<0.000000e+00> : vector<4x16xf32>
    %1 = vector.multi_reduction <add>, %0, %cst [0] : vector<2x4x16xf32> to vector<4x16xf32>
    %cst_2 = arith.constant dense<0.000000e+00> : vector<4xf32>
    %2 = vector.multi_reduction <add>, %1, %cst_2 [1] : vector<4x16xf32> to vector<4xf32>
    %3 = vector.shape_cast %2 : vector<4xf32> to vector<4x1xf32>
    %4 = arith.mulf %0, %0 : vector<2x4x16xf32>
    %cst_3 = arith.constant dense<0.000000e+00> : vector<4x16xf32>
    %5 = vector.multi_reduction <add>, %4, %cst_3 [0] : vector<2x4x16xf32> to vector<4x16xf32>
    %cst_4 = arith.constant dense<0.000000e+00> : vector<4xf32>
    %6 = vector.multi_reduction <add>, %5, %cst_4 [1] : vector<4x16xf32> to vector<4xf32>
    %7 = vector.shape_cast %6 : vector<4xf32> to vector<4x1xf32>
    %cst_5 = arith.constant 3.125000e-02 : f32
    %8 = vector.broadcast %cst_5 : f32 to vector<4x1xf32>
    %9 = arith.mulf %3, %8 : vector<4x1xf32>
    %cst_6 = arith.constant 3.125000e-02 : f32
    %10 = vector.broadcast %cst_6 : f32 to vector<4x1xf32>
    %11 = arith.mulf %7, %10 : vector<4x1xf32>
    %12 = arith.mulf %9, %9 : vector<4x1xf32>
    %13 = arith.subf %11, %12 : vector<4x1xf32>
    %cst_7 = arith.constant 0.000000e+00 : f32
    %14 = vector.broadcast %cst_7 : f32 to vector<4x1xf32>
    %15 = arith.maximumf %13, %14 : vector<4x1xf32>
    %c0_8 = arith.constant 0 : index
    %c0_9 = arith.constant 0 : index
    %16 = vector.load %arg2[%c0_8, %c0_9] : memref<4x1xf32, #tpu.memory_space<vmem>>, vector<4x1xf32>
    %cst_10 = arith.constant 9.99999974E-6 : f32
    %17 = vector.broadcast %cst_10 : f32 to vector<4x1xf32>
    %18 = arith.addf %15, %17 : vector<4x1xf32>
    %19 = math.rsqrt %18 : vector<4x1xf32>
    %20 = arith.mulf %16, %19 : vector<4x1xf32>
    %c0_11 = arith.constant 0 : index
    %c0_12 = arith.constant 0 : index
    %21 = vector.load %arg3[%c0_11, %c0_12] : memref<4x1xf32, #tpu.memory_space<vmem>>, vector<4x1xf32>
    %22 = arith.mulf %9, %20 : vector<4x1xf32>
    %23 = arith.subf %21, %22 : vector<4x1xf32>
    %24 = arith.cmpf one, %0, %0 : vector<2x4x16xf32>
    %25 = arith.extui %24 : vector<2x4x16xi1> to vector<2x4x16xi32>
    %26 = arith.sitofp %25 : vector<2x4x16xi32> to vector<2x4x16xf32>
    %cst_13 = arith.constant dense<0.000000e+00> : vector<4x16xf32>
    %27 = vector.multi_reduction <add>, %26, %cst_13 [0] : vector<2x4x16xf32> to vector<4x16xf32>
    %cst_14 = arith.constant dense<0.000000e+00> : vector<4xf32>
    %28 = vector.multi_reduction <add>, %27, %cst_14 [1] : vector<4x16xf32> to vector<4xf32>
    %29 = vector.shape_cast %28 : vector<4xf32> to vector<4x1xf32>
    %cst_15 = arith.constant dense<0.000000e+00> : vector<1xf32>
    %30 = vector.multi_reduction <add>, %29, %cst_15 [0] : vector<4x1xf32> to vector<1xf32>
    %31 = vector.shape_cast %30 : vector<1xf32> to vector<1x1xf32>
    %cst_16 = arith.constant 0.000000e+00 : f32
    %32 = vector.broadcast %cst_16 : f32 to vector<1x1xf32>
    %33 = arith.cmpf ogt, %31, %32 : vector<1x1xf32>
    %cst_17 = arith.constant 1.000000e+00 : f32
    %34 = vector.shape_cast %33 : vector<1x1xi1> to vector<1x1xi1>
    %35 = vector.broadcast %34 : vector<1x1xi1> to vector<4x1xi1>
    %36 = vector.broadcast %cst_17 : f32 to vector<4x1xf32>
    %37 = arith.select %35, %36, %20 : vector<4x1xi1>, vector<4x1xf32>
    %cst_18 = arith.constant -0.000000e+00 : f32
    %38 = vector.shape_cast %33 : vector<1x1xi1> to vector<1x1xi1>
    %39 = vector.broadcast %38 : vector<1x1xi1> to vector<4x1xi1>
    %40 = vector.broadcast %cst_18 : f32 to vector<4x1xf32>
    %41 = arith.select %39, %40, %23 : vector<4x1xi1>, vector<4x1xf32>
    %42 = vector.shape_cast %37 : vector<4x1xf32> to vector<1x4x1xf32>
    %43 = vector.broadcast %42 : vector<1x4x1xf32> to vector<2x4x16xf32>
    %44 = arith.mulf %0, %43 : vector<2x4x16xf32>
    %45 = vector.shape_cast %41 : vector<4x1xf32> to vector<1x4x1xf32>
    %46 = vector.broadcast %45 : vector<1x4x1xf32> to vector<2x4x16xf32>
    %47 = arith.addf %44, %46 : vector<2x4x16xf32>
    %c0_19 = arith.constant 0 : index
    %c0_20 = arith.constant 0 : index
    %c0_21 = arith.constant 0 : index
    %48 = vector.load %arg4[%c0_19, %c0_20, %c0_21] : memref<2x4x16xf32, #tpu.memory_space<vmem>>, vector<2x4x16xf32>
    tpu.vector_store %arg4[%c0_19, %c0_20, %c0_21], %47 {strides = array<i32>} : memref<2x4x16xf32, #tpu.memory_space<vmem>>, vector<2x4x16xf32>,
    return
  }
  func.func @transform_0(%arg0: i32) -> (i32, i32, i32) {
    %c0_i32 = arith.constant 0 : i32
    %c0_i32_0 = arith.constant 0 : i32
    %c0_i32_1 = arith.constant 0 : i32
    %c0_i32_2 = arith.constant 0 : i32
    return %c0_i32, %c0_i32_0, %c0_i32_1 : i32, i32, i32
  }
  func.func @transform_1(%arg0: i32) -> (i32, i32) {
    %c0_i32 = arith.constant 0 : i32
    %c0_i32_0 = arith.constant 0 : i32
    %c0_i32_1 = arith.constant 0 : i32
    return %c0_i32, %c0_i32_0 : i32, i32
  }
  func.func @transform_2(%arg0: i32) -> (i32, i32) {
    %c0_i32 = arith.constant 0 : i32
    %c0_i32_0 = arith.constant 0 : i32
    %c0_i32_1 = arith.constant 0 : i32
    return %c0_i32, %c0_i32_0 : i32, i32
  }
  func.func @transform_3(%arg0: i32) -> (i32, i32, i32) {
    %c0_i32 = arith.constant 0 : i32
    %c0_i32_0 = arith.constant 0 : i32
    %c0_i32_1 = arith.constant 0 : i32
    %c0_i32_2 = arith.constant 0 : i32
    return %c0_i32, %c0_i32_0, %c0_i32_1 : i32, i32, i32
  }
}

</mosaic_0001>

<bundles_post_ra>
// kernel: batch_norm_1d.1
= control target key start
LH: loop header
LB: loop body
LE: loop exit
PB: predicated region body
PF: predicated region fallthrough
CT: control target
= control target key end

     0   :  { %vm17_vm0 = vcmask 125952   ;;  %s217_s0 = inlined_call_operand.vmem [shape: f32[2,4,16], index: 0, kind: input, shape index: {}]   ;;  %s218_s1 = inlined_call_operand.vmem [shape: f32[4,1], index: 1, kind: input, shape index: {}]   ;;  %s219_s2 = inlined_call_operand.vmem [shape: f32[4,1], index: 2, kind: input, shape index: {}]   ;;  %s220_s3 = inlined_call_operand.hbm [shape: f32[2,4,16], index: 3, kind: output, shape index: {}]  }
   0x1   :  { %v178_v0 = vld [vmem:[%s217_s0] sm:$0xf]  ;;  %v183_v1 = vld [vmem:[%s217_s0 + $0x4] sm:$0xf] }
   0x2   :  { %v18_v2 = vsel %vm17_vm0, %v178_v0, 0.0  ;;  %v19_v3 = vsel %vm17_vm0, %v183_v1, 0.0  ;;  %v24_v4 = vmul.f32 %v178_v0, %v178_v0  ;;  %v25_v5 = vmul.f32 %v183_v1, %v183_v1 }
   0x3   :  { %8 = vsyncpa [#allocation3], 0  ;;  %v20_v6 = vadd.f32 %v19_v3, %v18_v2  ;;  %vm53_vm1 = vcmp.ne.f32.partialorder %v178_v0, %v178_v0  ;;  %vm54_vm2 = vcmp.ne.f32.partialorder %v183_v1, %v183_v1  ;;  %v150_v9 = vmov 0.0   ;;  %v37_v40 = vld [vmem:[%s218_s1] sm:$0xf]  ;;  %s152_s19 = smov [#allocation2]  }
   0x4   :  { %v26_v7 = vsel %vm17_vm0, %v24_v4, 0.0  ;;  %v27_v8 = vsel %vm17_vm0, %v25_v5, 0.0  ;;  %v112_v10 = vsel %vm53_vm1, 1.0, %v150_v9  ;;  %v113_v11 = vsel %vm54_vm2, 1.0, %v150_v9  ;;  %v50_v45 = vld [vmem:[%s219_s2] sm:$0xf] }
   0x5   :  { %v21_v12 = vsel %vm17_vm0, %v20_v6, 0.0  ;;  %v59_v13 = vsel %vm17_vm0, %v112_v10, 0.0  ;;  %v60_v14 = vsel %vm17_vm0, %v113_v11, 0.0  ;;  %v28_v16 = vadd.f32 %v27_v8, %v26_v7  ;;  %s98_s20 = sshll.u32 %s152_s19, 4  ;;  %s100_s22 = sshll.u32 %s220_s3, 4  ;;  %s99_s20 = int_to_ptr.vmem [resolvable:$true] %s98_s20  ;;  %s101_s22 = int_to_ptr.hbm [resolvable:$true] %s100_s22 }
   0x6   :  { %22 = vadd.xlane.f32.xlu0 %v21_v12  ;;  %v61_v15 = vadd.f32 %v60_v14, %v59_v13  ;;  %v151_v19 = vmov 0   ;;  %vm65_vm3 = vcmask 1043456   ;;  %s153_s2 = smov 64   ;;  %s154_s23 = smov 4  }
   0x7   :  { %v29_v18 = vsel %vm17_vm0, %v28_v16, 0.0  ;;  %119 = vset.pattern.permute.xlu1 %v151_v19  ;;  %120 = vset.pattern.permute.xlu2 %v151_v19 }
   0x8   :  { %v62_v17 = vsel %vm17_vm0, %v61_v15, 0.0  ;;  %121 = vset.pattern.permute.xlu0 %v151_v19 }
   0x9   :  { %63 = vadd.xlane.f32.xlu1 %v62_v17 }
   0xe   :  { %30 = vadd.xlane.f32.xlu0 %v29_v18 }
  0x79   :  { %v23_v20 = vpop.xlane.xlu0 %22 }
  0x7a   :  { %v32_v21 = vmul.f32 0.03125, %v23_v20 }
  0x7c   :  { %v64_v22 = vpop.xlane.xlu1 %63  ;;  %v34_v24 = vmul.f32 %v32_v21, %v32_v21 }
  0x7d   :  { %v66_v26 = vsel %vm65_vm3, %v64_v22, 0.0 }
  0x7e   :  { %v67_v28 = vrot.slane %v66_v26, 4 }
  0x80   :  { %v68_v31 = vadd.f32 %v67_v28, %v66_v26 }
  0x81   :  { %v31_v23 = vpop.xlane.xlu0 %30 }
  0x82   :  { %v33_v25 = vmul.f32 0.03125, %v31_v23  ;;  %v69_v32 = vrot.slane %v68_v31, 2 }
  0x84   :  { %v35_v27 = vsub.f32 %v33_v25, %v34_v24  ;;  %v70_v35 = vadd.f32 %v69_v32, %v68_v31 }
  0x86   :  { %v36_v29 = vmax.f32 %v35_v27, 0.0  ;;  %v71_v38 = vrot.slane %v70_v35, 1 }
  0x88   :  { %v38_v30 = vadd.f32 1e-05, %v36_v29  ;;  %v72_v42 = vadd.f32 %v71_v38, %v70_v35 }
  0x8a   :  { %122 = vrsqrt.f32 %v38_v30  ;;  %vm45_vm5 = vweird.f32 %v38_v30  ;;  %vm73_vm7 = vcmp.gt.f32.partialorder %v72_v42, 0.0 }
  0x90   :  { %v123_v33 = vpop.eup %122 }
  0x91   :  { %v40_v34 = vmul.f32 %v123_v33, %v38_v30  ;;  %vm46_vm4 = vweird.f32 %v123_v33 }
  0x92   :  { %vm47_vm6 = vmor %vm45_vm5, %vm46_vm4 }
  0x93   :  { %v41_v36 = vmul.f32 %v123_v33, %v40_v34 }
  0x95   :  { %v42_v37 = vmul.f32 0.5, %v41_v36 }
  0x97   :  { %v43_v39 = vsub.f32 1.5, %v42_v37 }
  0x99   :  { %v44_v41 = vmul.f32 %v123_v33, %v43_v39 }
  0x9b   :  { %v48_v43 = vsel %vm47_vm6, %v123_v33, %v44_v41 }
  0x9c   :  { %v49_v44 = vmul.f32 %v48_v43, %v37_v40 }
  0x9e   :  { %v76_v46 = vsel %vm73_vm7, 1.0, %v49_v44  ;;  %v51_v47 = vmul.f32 %v49_v44, %v32_v21 }
  0x9f   :  { %80 = vperm.xlu1 %119, %v76_v46  }
  0xa0   :  { %v52_v48 = vsub.f32 %v50_v45, %v51_v47 }
  0xa2   :  { %v77_v49 = vsel %vm73_vm7, -0.0, %v52_v48 }
  0xa3   :  { %87 = vperm.xlu2 %120, %v77_v49  }
  0xfd   :  { %v88_v53 = vpop.permute.xlu2 %87 }
 0x111   :  { %v81_v50 = vpop.permute.xlu1 %80 }
 0x112   :  { %v83_v51 = vmul.f32 %v81_v50, %v178_v0  ;;  %v84_v52 = vmul.f32 %v81_v50, %v183_v1 }
 0x114   :  { %v90_v54 = vadd.f32 %v88_v53, %v83_v51  ;;  %v91_v55 = vadd.f32 %v88_v53, %v84_v52 }
 0x116   :  { %92 = vst.msk [vmem:[#allocation2] sm:$0xf] %vm17_vm0, %v90_v54 }
 0x117   :  { %93 = vst.msk [vmem:[#allocation2 + $0x4] sm:$0xf] %vm17_vm0, %v91_v55 }
 0x118   :  { %106 = dma.vmem_to_hbm [thread:$0]  %s99_s20, 128, %s101_s22, [#allocation3], %s153_s2, %s153_s2, %s154_s23  }
 0x119   :  { %148 = dma.done.wait [#allocation3], 128  }
 0x11a   :  { %149 = vsyncadd [#allocation3], 4294967168 }
 0x11b   :  { %111 = vsyncpa [#allocation3], 1 }

</bundles_post_ra>
